<compile_context>
chip_gen: v7x
topology: tpu7x:2x2x1
jax: 0.10.0
libtpu: 0.0.40
codegen_flags: <defaults>
</compile_context>

<pallas_src>
import jax
import jax.numpy as jnp
from jax.experimental import pallas as pl
from jax.experimental.pallas import tpu as pltpu


def _linreg_kernel(w_ref, b_ref, x_ref, o_ref):
    # Elementwise hot path: scalar-from-SMEM broadcast is free on the VPU.
    o_ref[...] = x_ref[...] * w_ref[0] + b_ref[0]


def _choose_layout(n: int):
    """Pick a lane-dense (rows, LANE) slab and a row tile for the grid."""
    # Lane extent: one vreg width for tiny inputs, 1024 lanes for larger ones.
    lane = 1024 if n >= 8 * 1024 else 128
    rows = pl.cdiv(n, lane)
    # Row tile: multiple of 8 sublanes, grown up to 512 rows (2 MiB f32 tile)
    # so per-step grid overhead is amortized while staying far below the
    # v7x 64 MiB VMEM budget even with double-buffered in+out.
    row_tile = 8
    while row_tile < 512 and row_tile * 2 <= rows:
        row_tile *= 2
    rows_padded = pl.cdiv(rows, row_tile) * row_tile
    return lane, row_tile, rows_padded


def linear_reg_forward(x: jax.Array, weights: jax.Array, bias: jax.Array) -> jax.Array:
    """Pallas equivalent of LinearRegModel.forward: weights * x + bias."""
    assert x.ndim == 1
    n = x.shape[0]
    lane, row_tile, rows = _choose_layout(n)
    total = rows * lane

    # Wrapper-side pad/reshape is free layout plumbing; padded tail is sliced off.
    x2d = jnp.pad(x, (0, total - n)).reshape(rows, lane)

    out2d = pl.pallas_call(
        _linreg_kernel,
        out_shape=jax.ShapeDtypeStruct((rows, lane), x.dtype),
        grid_spec=pl.GridSpec(
            grid=(rows // row_tile,),
            in_specs=[
                pl.BlockSpec(memory_space=pltpu.SMEM),           # weights (1,)
                pl.BlockSpec(memory_space=pltpu.SMEM),           # bias (1,)
                pl.BlockSpec((row_tile, lane), lambda i: (i, 0)),  # x tile
            ],
            out_specs=pl.BlockSpec((row_tile, lane), lambda i: (i, 0)),
        ),
        compiler_params=pltpu.CompilerParams(
            dimension_semantics=("parallel",),      # 2x TCs on v7x; no-op on v5e/v6e
            vmem_limit_bytes=32 * 1024 * 1024,      # safe on v5e/v6e/v7x
        ),
    )(weights, bias, x2d)

    return out2d.reshape(total)[:n]


if __name__ == "__main__":
    key = jax.random.PRNGKey(0)
    kw, kb = jax.random.split(key)

    # nn.Parameter(torch.randn(1)) analogues — deterministic synthetic init.
    weights = jax.random.normal(kw, (1,), dtype=jnp.float32)
    bias = jax.random.normal(kb, (1,), dtype=jnp.float32)

    # x = torch.arange(0, 1, 0.01) -> shape (100,): single (8, 128) vreg tile.
    x = jnp.arange(0.0, 1.0, 0.01, dtype=jnp.float32)
    y = linear_reg_forward(x, weights, bias)
    jax.block_until_ready(y)
    assert y.shape == x.shape
    assert jnp.allclose(y, weights * x + bias, atol=1e-6, rtol=1e-6)

    # Exercise the multi-step tiled grid path at a larger (still small) size.
    x_big = jax.random.normal(jax.random.PRNGKey(1), (12345,), dtype=jnp.float32)
    y_big = linear_reg_forward(x_big, weights, bias)
    jax.block_until_ready(y_big)
    assert jnp.allclose(y_big, weights * x_big + bias, atol=1e-5, rtol=1e-5)

    print("KERNEL_OK")
</pallas_src>

<mosaic_0001>
module attributes {stable_mosaic.version = 11 : i64} {
  func.func @_linreg_kernel(%arg0: i32, %arg1: memref<1xf32, #tpu.memory_space<smem>>, %arg2: memref<1xf32, #tpu.memory_space<smem>>, %arg3: memref<8x128xf32, #tpu.memory_space<vmem>>, %arg4: memref<8x128xf32, #tpu.memory_space<vmem>>) attributes {dimension_semantics = [#tpu.dimension_semantics<parallel>], iteration_bounds = array<i64: 1>, scalar_prefetch = 0 : i64, scratch_operands = 0 : i64, tpu.core_type = #tpu.core_type<tc>, window_params = [{transform_indices = @transform_0, window_bounds = array<i64: 1>}, {transform_indices = @transform_1, window_bounds = array<i64: 1>}, {transform_indices = @transform_2, window_bounds = array<i64: 8, 128>}, {transform_indices = @transform_3, window_bounds = array<i64: 8, 128>}]} {
    %c0 = arith.constant 0 : index
    %c0_0 = arith.constant 0 : index
    %0 = vector.load %arg3[%c0, %c0_0] : memref<8x128xf32, #tpu.memory_space<vmem>>, vector<8x128xf32>
    %c0_1 = arith.constant 0 : index
    %1 = memref.load %arg1[%c0_1] : memref<1xf32, #tpu.memory_space<smem>>
    %2 = vector.broadcast %1 : f32 to vector<8x128xf32>
    %3 = arith.mulf %0, %2 : vector<8x128xf32>
    %c0_2 = arith.constant 0 : index
    %4 = memref.load %arg2[%c0_2] : memref<1xf32, #tpu.memory_space<smem>>
    %5 = vector.broadcast %4 : f32 to vector<8x128xf32>
    %6 = arith.addf %3, %5 : vector<8x128xf32>
    %c0_3 = arith.constant 0 : index
    %c0_4 = arith.constant 0 : index
    %7 = vector.load %arg4[%c0_3, %c0_4] : memref<8x128xf32, #tpu.memory_space<vmem>>, vector<8x128xf32>
    tpu.vector_store %arg4[%c0_3, %c0_4], %6 {strides = array<i32>} : memref<8x128xf32, #tpu.memory_space<vmem>>, vector<8x128xf32>,
    return
  }
  func.func @transform_0(%arg0: i32) -> i32 {
    %c0_i32 = arith.constant 0 : i32
    %c0_i32_0 = arith.constant 0 : i32
    return %c0_i32 : i32
  }
  func.func @transform_1(%arg0: i32) -> i32 {
    %c0_i32 = arith.constant 0 : i32
    %c0_i32_0 = arith.constant 0 : i32
    return %c0_i32 : i32
  }
  func.func @transform_2(%arg0: i32) -> (i32, i32) {
    %c0_i32 = arith.constant 0 : i32
    %c0_i32_0 = arith.constant 0 : i32
    return %arg0, %c0_i32 : i32, i32
  }
  func.func @transform_3(%arg0: i32) -> (i32, i32) {
    %c0_i32 = arith.constant 0 : i32
    %c0_i32_0 = arith.constant 0 : i32
    return %arg0, %c0_i32 : i32, i32
  }
}

</mosaic_0001>

<bundles_post_ra>
// kernel: tpu_custom_call.1
= control target key start
LH: loop header
LB: loop body
LE: loop exit
PB: predicated region body
PF: predicated region fallthrough
CT: control target
= control target key end

     0   :  { %10 = vsyncpa [#allocation5], 0  ;;  %s154_s0 = inlined_call_operand.<no memory space> [shape: f32[1], index: 0, kind: input, shape index: {}]   ;;  %s155_s1 = inlined_call_operand.<no memory space> [shape: f32[1], index: 1, kind: input, shape index: {}]   ;;  %s156_s2 = inlined_call_operand.hbm [shape: f32[8,128], index: 2, kind: input, shape index: {}]   ;;  %s157_s3 = inlined_call_operand.hbm [shape: f32[8,128], index: 3, kind: output, shape index: {}]  }
   0x1   :  { %11 = vsyncpa [#allocation6], 0  ;;  %s102_s12 = smov [#allocation4]   ;;  %s54_s16 = scalar_lea.hbm %s156_s2, 128 }
   0x2   :  { %s22_s13 = sshll.u32 %s102_s12, 4  ;;  %p55_p0 = scmp.ne.s32.totalorder %s156_s2, %s54_s16  ;;  %s23_s13 = int_to_ptr.vmem [resolvable:$true] %s22_s13 }
   0x3   :  { %p58_p1 = scmp.lt.u32.totalorder %s54_s16, %s156_s2 }
   0x5   :  { %p60_p2 = pnand %p58_p1, %p55_p0 }
   0x7   :  { %63 = shalt.err (!%p60_p2)
}
   0x8   :  { %s64_s21 = scalar_lea.vmem %s23_s13, 128  ;;  %p69_p4 = scmp.lt.s32.totalorder %s23_s13, %s23_s13 }
   0x9   :  { %p65_p3 = scmp.ne.s32.totalorder %s23_s13, %s64_s21  ;;  %p70_p5 = scmp.lt.s32.totalorder %s64_s21, %s64_s21 }
   0xb   :  { %p71_p6 = por %p70_p5, %p69_p4 }
   0xd   :  { %p72_p7 = pnand %p71_p6, %p65_p3 }
   0xf   :  { %75 = shalt.err (!%p72_p7)
}
  0x10   :  { %25 = dma.hbm_to_vmem [thread:$0]  %s156_s2, 128, %s23_s13, [#allocation5]  }
  0x11   :  { %98 = dma.done.wait [#allocation5], 128  }
  0x12   :  { %99 = vsyncadd [#allocation5], 4294967168  ;;  %v31_v0 = vstv %s154_s0  ;;  %v29_v1 = vld [vmem:[#allocation4] sm:$0xff]  ;;  %v34_v2 = vstv %s155_s1  ;;  %s103_s28 = smov [#allocation7]  }
  0x13   :  { %s43_s29 = sshll.u32 %s103_s28, 4  ;;  %v32_v3 = vmul.f32 %v31_v0, %v29_v1  ;;  %s44_s29 = int_to_ptr.vmem [resolvable:$true] %s43_s29 }
  0x14   :  { %s76_s30 = scalar_lea.vmem %s44_s29, 128  ;;  %p81_p9 = scmp.lt.s32.totalorder %s44_s29, %s44_s29 }
  0x15   :  { %v35_v4 = vadd.f32 %v34_v2, %v32_v3  ;;  %p77_p8 = scmp.ne.s32.totalorder %s44_s29, %s76_s30  ;;  %p82_p10 = scmp.lt.s32.totalorder %s76_s30, %s76_s30 }
  0x17   :  { %36 = vst [vmem:[#allocation7] sm:$0xff] %v35_v4  ;;  %p83_p11 = por %p82_p10, %p81_p9 }
  0x19   :  { %p84_p12 = pnand %p83_p11, %p77_p8 }
  0x1b   :  { %87 = shalt.err (!%p84_p12)
}
  0x1c   :  { %s88_s4 = scalar_lea.hbm %s157_s3, 128 }
  0x1d   :  { %p89_p13 = scmp.ne.s32.totalorder %s157_s3, %s88_s4  ;;  %p92_p0 = scmp.lt.u32.totalorder %s88_s4, %s157_s3 }
  0x1f   :  { %p94_p1 = pnand %p92_p0, %p89_p13 }
  0x21   :  { %97 = shalt.err (!%p94_p1)
}
  0x22   :  { %46 = dma.vmem_to_hbm [thread:$0]  %s44_s29, 128, %s157_s3, [#allocation6]  }
  0x23   :  { %100 = dma.done.wait [#allocation6], 128  }
  0x24   :  { %101 = vsyncadd [#allocation6], 4294967168 }
  0x25   :  { %50 = vsyncpa [#allocation5], 1 }
  0x26   :  { %51 = vsyncpa [#allocation6], 1 }

</bundles_post_ra>
